<compile_context>
chip_gen: v7x
topology: tpu7x:2x2x1
jax: 0.10.0
libtpu: 0.0.40
codegen_flags: <defaults>
</compile_context>

<pallas_src>
import jax
import jax.numpy as jnp
from jax import lax
from jax.experimental import pallas as pl
from jax.experimental.pallas import tpu as pltpu


def _pred_head_kernel(x_ref, w_ref, b_ref, o_ref):
    # x_ref: (TM, H)           input rows
    # w_ref: (TN, H)           weight in nn.Linear (C, H) layout (no transpose)
    # b_ref: (1, TN)           bias slice
    # o_ref: (TM, TN)          output tile
    acc = lax.dot_general(
        x_ref[...], w_ref[...],
        dimension_numbers=(((1,), (1,)), ((), ())),   # contract on H
        preferred_element_type=jnp.float32)
    o_ref[...] = (acc + b_ref[...].astype(jnp.float32)).astype(o_ref.dtype)


def _round_up(x, m):
    return ((x + m - 1) // m) * m


def pred_head(x, weight, bias, *, tm=512, tn=512):
    """Equivalent of nn.Linear(bert_output_dim, nclasses)(x).

    x:      (..., H)
    weight: (C, H)   -- PyTorch nn.Linear layout (used as-is, no transpose)
    bias:   (C,)
    returns (..., C)
    """
    H = x.shape[-1]
    C = weight.shape[0]
    lead_shape = x.shape[:-1]

    x2d = x.reshape(-1, H)
    M = x2d.shape[0]
    itemsize = jnp.dtype(x2d.dtype).itemsize
    sublane = 8 if itemsize >= 4 else 16      # f32: 8, bf16: 16

    # --- M tiling: big tiles when M is large, single (8/16)-aligned tile when small.
    TM = tm if M >= tm else _round_up(max(M, 1), sublane)
    M_pad = _round_up(M, TM)

    # --- C padding to a lane-dense multiple of 128, plus C tiling for large heads.
    C_pad = _round_up(C, 128)
    TN = tn if C_pad >= tn else C_pad
    C_pad = _round_up(C_pad, TN)

    if M_pad != M:
        x2d = jnp.pad(x2d, ((0, M_pad - M), (0, 0)))
    w = weight
    b = bias
    if C_pad != C:
        w = jnp.pad(w, ((0, C_pad - C), (0, 0)))
        b = jnp.pad(b, ((0, C_pad - C),))
    b2d = b.reshape(1, C_pad)

    grid = (M_pad // TM, C_pad // TN)

    out_dtype = x.dtype
    flops = 2 * M_pad * H * C_pad
    bytes_accessed = (
        M_pad * H * itemsize                      # x (read once per C tile in worst case)
        + C_pad * H * jnp.dtype(w.dtype).itemsize # weight
        + C_pad * jnp.dtype(b.dtype).itemsize     # bias
        + M_pad * C_pad * itemsize                # output
    )

    out = pl.pallas_call(
        _pred_head_kernel,
        out_shape=jax.ShapeDtypeStruct((M_pad, C_pad), out_dtype),
        grid=grid,
        in_specs=[
            pl.BlockSpec((TM, H), lambda i, j: (i, 0)),   # rows: follow i only
            pl.BlockSpec((TN, H), lambda i, j: (j, 0)),   # weight: follow j only
            pl.BlockSpec((1, TN), lambda i, j: (0, j)),   # bias: follow j only
        ],
        out_specs=pl.BlockSpec((TM, TN), lambda i, j: (i, j)),
        compiler_params=pltpu.CompilerParams(
            # No reduction axis: every output tile is independent -> both axes
            # parallel (lets v7x shard the grid across its 2 TensorCores).
            dimension_semantics=("parallel", "parallel"),
        ),
        cost_estimate=pl.CostEstimate(
            flops=flops, transcendentals=0, bytes_accessed=bytes_accessed),
    )(x2d, w, b2d)

    out = out[:M, :C]
    return out.reshape(*lead_shape, C)


if __name__ == "__main__":
    # Small shapes consistent with the module:
    #   bert_output_dim = 32, nclasses = 16, input = (batch=2, seq=8, hidden=32)
    bert_output_dim = 32
    nclasses = 16
    batch, seq = 2, 8

    key = jax.random.PRNGKey(0)
    kx, kw, kb = jax.random.split(key, 3)

    x = jax.random.normal(kx, (batch, seq, bert_output_dim), dtype=jnp.float32)

    # Deterministic synthetic parameter init (shapes per nn.Linear(H, C)).
    bound = 1.0 / (bert_output_dim ** 0.5)
    weight = jax.random.uniform(
        kw, (nclasses, bert_output_dim), minval=-bound, maxval=bound,
        dtype=jnp.float32)
    bias = jax.random.uniform(
        kb, (nclasses,), minval=-bound, maxval=bound, dtype=jnp.float32)

    out = pred_head(x, weight, bias)
    out = jax.block_until_ready(out)

    # Cross-check against plain JAX reference of nn.Linear semantics.
    ref = x @ weight.T + bias
    assert out.shape == (batch, seq, nclasses)
    assert jnp.allclose(out, ref, atol=1e-5, rtol=1e-5)

    print("KERNEL_OK")
</pallas_src>

<mosaic_0001>
module attributes {stable_mosaic.version = 11 : i64} {
  func.func @_pred_head_kernel(%arg0: i32, %arg1: i32, %arg2: memref<16x32xf32, #tpu.memory_space<vmem>>, %arg3: memref<128x32xf32, #tpu.memory_space<vmem>>, %arg4: memref<1x128xf32, #tpu.memory_space<vmem>>, %arg5: memref<16x128xf32, #tpu.memory_space<vmem>>) attributes {dimension_semantics = [#tpu.dimension_semantics<parallel>, #tpu.dimension_semantics<parallel>], iteration_bounds = array<i64: 1, 1>, scalar_prefetch = 0 : i64, scratch_operands = 0 : i64, tpu.core_type = #tpu.core_type<tc>, window_params = [{transform_indices = @transform_0, window_bounds = array<i64: 16, 32>}, {transform_indices = @transform_1, window_bounds = array<i64: 128, 32>}, {transform_indices = @transform_2, window_bounds = array<i64: 1, 128>}, {transform_indices = @transform_3, window_bounds = array<i64: 16, 128>}]} {
    %c0 = arith.constant 0 : index
    %c0_0 = arith.constant 0 : index
    %0 = vector.load %arg2[%c0, %c0_0] : memref<16x32xf32, #tpu.memory_space<vmem>>, vector<16x32xf32>
    %c0_1 = arith.constant 0 : index
    %c0_2 = arith.constant 0 : index
    %1 = vector.load %arg3[%c0_1, %c0_2] : memref<128x32xf32, #tpu.memory_space<vmem>>, vector<128x32xf32>
    %cst = arith.constant dense<0.000000e+00> : vector<16x128xf32>
    %2 = tpu.matmul %0, %1, %cst {dimension_numbers = #tpu.dot_dimension_numbers<[1], [1], [0], [0], [0, 0, 1, 0], [], []>} : vector<16x32xf32>, vector<128x32xf32>, vector<16x128xf32> -> vector<16x128xf32>
    %c0_3 = arith.constant 0 : index
    %c0_4 = arith.constant 0 : index
    %3 = vector.load %arg4[%c0_3, %c0_4] : memref<1x128xf32, #tpu.memory_space<vmem>>, vector<1x128xf32>
    %4 = vector.broadcast %3 : vector<1x128xf32> to vector<16x128xf32>
    %5 = arith.addf %2, %4 : vector<16x128xf32>
    %c0_5 = arith.constant 0 : index
    %c0_6 = arith.constant 0 : index
    %6 = vector.load %arg5[%c0_5, %c0_6] : memref<16x128xf32, #tpu.memory_space<vmem>>, vector<16x128xf32>
    tpu.vector_store %arg5[%c0_5, %c0_6], %5 {strides = array<i32>} : memref<16x128xf32, #tpu.memory_space<vmem>>, vector<16x128xf32>,
    return
  }
  func.func @transform_0(%arg0: i32, %arg1: i32) -> (i32, i32) {
    %c0_i32 = arith.constant 0 : i32
    %c0_i32_0 = arith.constant 0 : i32
    return %arg0, %c0_i32 : i32, i32
  }
  func.func @transform_1(%arg0: i32, %arg1: i32) -> (i32, i32) {
    %c0_i32 = arith.constant 0 : i32
    %c0_i32_0 = arith.constant 0 : i32
    return %arg1, %c0_i32 : i32, i32
  }
  func.func @transform_2(%arg0: i32, %arg1: i32) -> (i32, i32) {
    %c0_i32 = arith.constant 0 : i32
    %c0_i32_0 = arith.constant 0 : i32
    return %c0_i32, %arg1 : i32, i32
  }
  func.func @transform_3(%arg0: i32, %arg1: i32) -> (i32, i32) {
    %c0_i32 = arith.constant 0 : i32
    return %arg0, %arg1 : i32, i32
  }
}

</mosaic_0001>

<bundles_post_ra>
// kernel: tpu_custom_call.1
= control target key start
LH: loop header
LB: loop body
LE: loop exit
PB: predicated region body
PF: predicated region fallthrough
CT: control target
= control target key end

     0   :  { %vm40_vm0 = vcmask 261120   ;;  %s467_s0 = inlined_call_operand.vmem [shape: f32[16,32], index: 0, kind: input, shape index: {}]   ;;  %s468_s1 = inlined_call_operand.vmem [shape: f32[128,32], index: 1, kind: input, shape index: {}]   ;;  %s469_s2 = inlined_call_operand.vmem [shape: f32[1,128], index: 2, kind: input, shape index: {}]   ;;  %s470_s3 = inlined_call_operand.hbm [shape: f32[16,128], index: 3, kind: output, shape index: {}]  }
   0x1   :  { %v17_v0 = vld [vmem:[%s468_s1] sm:$0xff]  ;;  %v18_v1 = vld [vmem:[%s468_s1 + $0x8] sm:$0xff]  ;;  %v19_v2 = vld [vmem:[%s468_s1 + $0x10] sm:$0xff] }
   0x2   :  { %v260_v3 = vpack.c.bf16 %v18_v1, %v17_v0  ;;  %vm369_vm1 = vmpackc.low %vm40_vm0, %vm40_vm0  ;;  %v20_v5 = vld [vmem:[%s468_s1 + $0x18] sm:$0xff]  ;;  %v15_v7 = vld [vmem:[%s467_s0] sm:$0xff] }
   0x3   :  { %v266_v6 = vpack.c.bf16 %v20_v5, %v19_v2  ;;  %v21_v8 = vld [vmem:[%s468_s1 + $0x20] sm:$0xff]  ;;  %v22_v9 = vld [vmem:[%s468_s1 + $0x28] sm:$0xff]  ;;  %257 = vmatprep.mubr.msk.f32.mxu0 %vm40_vm0, %v15_v7 }
   0x4   :  { %262 = vmatprep.subr.msk.bf16.mxu0 %vm369_vm1, %v260_v3 }
   0x5   :  { %265 = vmatpush3.bf16.xpose.msk.msra.mxu0 %vm369_vm1, %v260_v3 }
   0x6   :  { %268 = vmatprep.subr.msk.bf16.mxu0 %vm369_vm1, %v266_v6 }
   0x7   :  { %8 = vsyncpa [#allocation3], 0  ;;  %v272_v10 = vpack.c.bf16 %v22_v9, %v21_v8  ;;  %v23_v11 = vld [vmem:[%s468_s1 + $0x30] sm:$0xff]  ;;  %v24_v12 = vld [vmem:[%s468_s1 + $0x38] sm:$0xff] }
   0x8   :  { %v278_v13 = vpack.c.bf16 %v24_v12, %v23_v11  ;;  %v25_v14 = vld [vmem:[%s468_s1 + $0x40] sm:$0xff]  ;;  %v26_v15 = vld [vmem:[%s468_s1 + $0x48] sm:$0xff]  ;;  %v27_v17 = vld [vmem:[%s468_s1 + $0x50] sm:$0xff] }
   0x9   :  { %v284_v16 = vpack.c.bf16 %v26_v15, %v25_v14  ;;  %v28_v18 = vld [vmem:[%s468_s1 + $0x58] sm:$0xff]  ;;  %v29_v20 = vld [vmem:[%s468_s1 + $0x60] sm:$0xff]  ;;  %v30_v21 = vld [vmem:[%s468_s1 + $0x68] sm:$0xff] }
   0xa   :  { %v290_v19 = vpack.c.bf16 %v28_v18, %v27_v17  ;;  %v296_v22 = vpack.c.bf16 %v30_v21, %v29_v20  ;;  %v31_v23 = vld [vmem:[%s468_s1 + $0x70] sm:$0xff]  ;;  %v32_v24 = vld [vmem:[%s468_s1 + $0x78] sm:$0xff]  ;;  %v16_v26 = vld [vmem:[%s467_s0 + $0x8] sm:$0xff]  ;;  %s335_s1 = smov [#allocation2]  }
   0xb   :  { %v302_v25 = vpack.c.bf16 %v32_v24, %v31_v23  ;;  %v188_v27 = vld [vmem:[%s469_s2] ss:$0 sm:$0xff]  ;;  %s177_s23 = sshll.u32 %s335_s1, 4  ;;  %s178_s23 = int_to_ptr.vmem [resolvable:$true] %s177_s23 }
   0xc   :  { %s311_s24 = scalar_lea.vmem %s178_s23, 256  ;;  %p316_p1 = scmp.lt.s32.totalorder %s178_s23, %s178_s23 }
   0xd   :  { %271 = vmatpush3.bf16.xpose.msk.msra.mxu0 %vm369_vm1, %v266_v6  ;;  %p312_p0 = scmp.ne.s32.totalorder %s178_s23, %s311_s24  ;;  %p317_p2 = scmp.lt.s32.totalorder %s311_s24, %s311_s24 }
   0xe   :  { %274 = vmatprep.subr.msk.bf16.mxu0 %vm369_vm1, %v272_v10 }
   0xf   :  { %p318_p3 = por %p317_p2, %p316_p1 }
  0x11   :  { %p319_p4 = pnand %p318_p3, %p312_p0 }
  0x15   :  { %277 = vmatpush3.bf16.xpose.msk.msra.mxu0 %vm369_vm1, %v272_v10 }
  0x16   :  { %280 = vmatprep.subr.msk.bf16.mxu0 %vm369_vm1, %v278_v13 }
  0x1d   :  { %283 = vmatpush3.bf16.xpose.msk.msra.mxu0 %vm369_vm1, %v278_v13 }
  0x1e   :  { %286 = vmatprep.subr.msk.bf16.mxu0 %vm369_vm1, %v284_v16 }
  0x25   :  { %289 = vmatpush3.bf16.xpose.msk.msra.mxu0 %vm369_vm1, %v284_v16 }
  0x26   :  { %292 = vmatprep.subr.msk.bf16.mxu0 %vm369_vm1, %v290_v19 }
  0x2d   :  { %295 = vmatpush3.bf16.xpose.msk.msra.mxu0 %vm369_vm1, %v290_v19 }
  0x2e   :  { %298 = vmatprep.subr.msk.bf16.mxu0 %vm369_vm1, %v296_v22 }
  0x35   :  { %301 = vmatpush3.bf16.xpose.msk.msra.mxu0 %vm369_vm1, %v296_v22 }
  0x36   :  { %304 = vmatprep.subr.msk.bf16.mxu0 %vm369_vm1, %v302_v25 }
  0x3d   :  { %307 = vmatpush3.bf16.xpose.msk.msra.mxu0 %vm369_vm1, %v302_v25 }
  0x44   :  { %258 = vmatmul.mubr.msk.f32.vlgmr.msra.gmra.mrb[0].mxu0 %vm40_vm0, %v16_v26 }
 0x117   :  { %v259_v28 = vpop.f32.mrb[0].mxu0 }
 0x118   :  { %v167_v29 = vadd.f32 %v259_v28, %v188_v27  ;;  %v161_v30 = vpop.f32.mrb[1].mxu0 }
 0x119   :  { %v162_v31 = vadd.f32 %v188_v27, %v161_v30 }
 0x11a   :  { %171 = vst [vmem:[#allocation2 + $0x8] sm:$0xff] %v167_v29 }
 0x11b   :  { %170 = vst [vmem:[#allocation2] sm:$0xff] %v162_v31 }
 0x11c   :  { %322 = shalt.err (!%p319_p4)
}
 0x11d   :  { %s323_s2 = scalar_lea.hbm %s470_s3, 256 }
 0x11e   :  { %p324_p5 = scmp.ne.s32.totalorder %s470_s3, %s323_s2  ;;  %p327_p6 = scmp.lt.u32.totalorder %s323_s2, %s470_s3 }
 0x120   :  { %p329_p7 = pnand %p327_p6, %p324_p5 }
 0x122   :  { %332 = shalt.err (!%p329_p7)
}
 0x123   :  { %s336_s30 = smov 128   ;;  %s337_s4 = smov 8  }
 0x124   :  { %183 = dma.vmem_to_hbm [thread:$0]  %s178_s23, 256, %s470_s3, [#allocation3], %s336_s30, %s336_s30, %s337_s4  }
 0x125   :  { %333 = dma.done.wait [#allocation3], 256  }
 0x126   :  { %334 = vsyncadd [#allocation3], 4294967040 }
 0x127   :  { %187 = vsyncpa [#allocation3], 1 }

</bundles_post_ra>
